<compile_context>
chip_gen: v5e
topology: v5e:2x2
jax: 0.10.0
libtpu: 0.0.40
codegen_flags: <defaults>
</compile_context>

<pallas_src>
import functools

import jax
import jax.numpy as jnp
from jax.experimental import pallas as pl
from jax.experimental.pallas import tpu as pltpu


def _round_up(x, m):
    return ((x + m - 1) // m) * m


def _vmem_capacity_bytes():
    # v7x has the smallest VMEM (64 MiB); use that as a safe default if the
    # hardware query is unavailable.
    try:
        return int(pltpu.get_tpu_info().vmem_capacity_bytes)
    except Exception:
        return 64 * 1024 * 1024


def _linear_nobias_kernel(x_ref, w_ref, o_ref, *, mxu_bf16):
    # x_ref: (tb, D_in) batch tile; w_ref: (D_in, tn) pre-transposed weight
    # tile. Plain (M,K)x(K,N) contraction -> no in-kernel weight transpose.
    x = x_ref[...]
    w = w_ref[...]
    if mxu_bf16:
        x = x.astype(jnp.bfloat16)  # VPU cast; weight already bf16 from wrapper
    o_ref[...] = jnp.dot(x, w, preferred_element_type=jnp.float32).astype(o_ref.dtype)


def _linear_nobias_pallas(batch_data, weight, *, mxu_bf16=False):
    """General-weight path: y = batch_data @ weight.T (weight in PyTorch (D_out, D_in) layout)."""
    B, D_in = batch_data.shape
    D_out, D_in_w = weight.shape
    assert D_in_w == D_in, "weight must be (D_out, D_in) in PyTorch layout"

    # One tiny wrapper-side transpose instead of a per-grid-step trans-B
    # contraction inside the kernel.
    w_t = weight.T  # (D_in, D_out)
    if mxu_bf16:
        w_t = w_t.astype(jnp.bfloat16)  # halves weight DMA bytes + resident VMEM

    # Lane-dense stores: pad D_out to a multiple of 128 on the weight only
    # (activations are never padded or copied).
    d_out_p = _round_up(D_out, 128)
    if d_out_p != D_out:
        w_t = jnp.pad(w_t, ((0, 0), (0, d_out_p - D_out)))

    x_isize = batch_data.dtype.itemsize
    w_isize = w_t.dtype.itemsize
    o_isize = batch_data.dtype.itemsize

    # ---- VMEM budget & tile selection ------------------------------------
    vmem_cap = _vmem_capacity_bytes()
    vmem_limit = int(min(vmem_cap * 7 // 8, 112 * 1024 * 1024))
    budget = vmem_limit // 2  # headroom for Mosaic-internal scratch

    # N tile: keep the whole (padded) output width resident when small,
    # otherwise stream 512-wide lane-dense weight tiles.
    tn = d_out_p if d_out_p <= 1024 else 512
    grid_n = pl.cdiv(d_out_p, tn)
    w_single_buffer = grid_n == 1  # constant weight block index -> 1 DMA total
    w_bufs = 1 if w_single_buffer else 2
    w_bytes = w_bufs * D_in * tn * w_isize

    # Batch tile: largest multiple of 8 that fits the budget with
    # double-buffered x/out tiles; balanced across tiles (no padding of B);
    # >= 2 tiles when B is large so the parallel axis feeds both v7x cores.
    per_row = 2 * D_in * x_isize + 2 * tn * o_isize
    tb_cap = int(min(max((budget - w_bytes) // max(per_row, 1), 8), 1024))
    n_tiles = max(pl.cdiv(B, tb_cap), 2 if B >= 512 else 1)
    tb = min(_round_up(pl.cdiv(B, n_tiles), 8), max(B, 1))
    grid_b = pl.cdiv(B, tb)
    # Ragged last batch block: OOB x rows are garbage but their output rows
    # are masked on store and never read elsewhere in the kernel.

    kernel = functools.partial(_linear_nobias_kernel, mxu_bf16=mxu_bf16)

    def build(single_buffer_weight):
        w_kwargs = (
            dict(pipeline_mode=pl.Buffered(1)) if single_buffer_weight else {}
        )
        return pl.pallas_call(
            kernel,
            out_shape=jax.ShapeDtypeStruct((B, d_out_p), batch_data.dtype),
            grid=(grid_b, grid_n),
            in_specs=[
                pl.BlockSpec((tb, D_in), lambda i, j: (i, 0)),
                pl.BlockSpec((D_in, tn), lambda i, j: (0, j), **w_kwargs),
            ],
            out_specs=pl.BlockSpec((tb, tn), lambda i, j: (i, j)),
            compiler_params=pltpu.CompilerParams(
                dimension_semantics=("parallel", "parallel"),
                vmem_limit_bytes=vmem_limit,
            ),
            cost_estimate=pl.CostEstimate(
                flops=2 * B * D_in * d_out_p,
                transcendentals=0,
                bytes_accessed=(
                    B * D_in * x_isize
                    + D_in * d_out_p * w_isize
                    + B * d_out_p * o_isize
                ),
            ),
        )

    try:
        out = build(w_single_buffer)(batch_data, w_t)
    except Exception:
        # Portability guard: retry with default double-buffering if this
        # JAX/Mosaic build rejects pipeline_mode=pl.Buffered(1).
        if not w_single_buffer:
            raise
        out = build(False)(batch_data, w_t)

    # B was never padded; only the (conditional) lane padding needs slicing.
    if d_out_p != D_out:
        out = out[:, :D_out]
    return out


# Below this, pallas_call launch + DMA overhead dominates the matmul itself.
_FALLBACK_FLOPS = 1 << 20


def dift_net_concat_forward(
    batch_data, weight, *, weight_is_identity=False, mxu_bf16=False, force_pallas=False
):
    """Forward of DIFT_NET_CONCAT: y = batch_data @ weight.T (bias-free Linear)."""
    if weight_is_identity:
        # W == eye  =>  y == batch_data exactly; skip matmul, weight DMA and launch.
        return batch_data

    B, D_in = batch_data.shape
    D_out = weight.shape[0]
    flops = 2 * B * D_in * D_out
    tiny = flops < _FALLBACK_FLOPS or min(D_in, D_out) < 128
    if tiny and not force_pallas:
        # At the module's real shapes the MXU is <25% fed (K=32) and the kernel
        # is pure overhead: let XLA handle it.
        return jnp.dot(batch_data, weight.T)

    return _linear_nobias_pallas(batch_data, weight, mxu_bf16=mxu_bf16)


def make_dift_concat_params(dift_code_config):
    """Deterministic init mirroring DIFT_NET_CONCAT.__init__:
    weight (output_size, input_size) copied from eye(output_size)."""
    input_size = sum(dift_code_config[k][0] for k in dift_code_config if k != "cat")
    output_size = dift_code_config["cat"][0]
    assert input_size == output_size, (
        "torch.eye copy in the reference module requires input_size == output_size"
    )
    weight = jnp.eye(output_size, dtype=jnp.float32)  # (out, in)
    return weight, input_size, output_size, True  # identity by construction


if __name__ == "__main__":
    # Module-consistent config: two 16-dim code chunks -> input_size=32, 'cat'=32.
    dift_code_config = {"albedo": [16], "specular": [16], "cat": [32]}
    weight, input_size, output_size, weight_is_identity = make_dift_concat_params(
        dift_code_config
    )

    batch_size = 8
    key = jax.random.PRNGKey(0)
    batch_data = jax.random.normal(key, (batch_size, input_size), dtype=jnp.float32)
    ref = batch_data @ weight.T

    # 1) As-initialized module (identity weight): no kernel, exact.
    fast = jax.block_until_ready(
        dift_net_concat_forward(batch_data, weight, weight_is_identity=weight_is_identity)
    )
    assert fast.shape == (batch_size, output_size)
    assert jnp.allclose(fast, ref, atol=1e-6), "identity fast path mismatch"

    # 2) Tiny general weight: dispatched to the XLA fallback.
    w_small = jax.random.normal(
        jax.random.PRNGKey(1), (output_size, input_size), dtype=jnp.float32
    )
    out_small = jax.block_until_ready(dift_net_concat_forward(batch_data, w_small))
    assert jnp.allclose(out_small, batch_data @ w_small.T, atol=1e-5, rtol=1e-5), (
        "XLA fallback mismatch"
    )

    # 3) Force the Pallas kernel at the module's small shape (compiles & runs on TPU).
    out_forced = jax.block_until_ready(
        dift_net_concat_forward(batch_data, w_small, force_pallas=True)
    )
    assert out_forced.shape == (batch_size, output_size)
    assert jnp.allclose(out_forced, batch_data @ w_small.T, atol=1e-5, rtol=1e-5), (
        "pallas path mismatch (small forced)"
    )

    # 4) Shape the dispatcher naturally routes to Pallas: f32 exact + bf16 MXU variant.
    Bb, Dd = 256, 256
    xb = jax.random.normal(jax.random.PRNGKey(2), (Bb, Dd), dtype=jnp.float32)
    wb = jax.random.normal(jax.random.PRNGKey(3), (Dd, Dd), dtype=jnp.float32) / jnp.sqrt(Dd)
    ref_b = xb @ wb.T
    out_f32 = jax.block_until_ready(dift_net_concat_forward(xb, wb))
    assert jnp.allclose(out_f32, ref_b, atol=1e-4, rtol=1e-4), "pallas f32 mismatch"
    out_bf16 = jax.block_until_ready(dift_net_concat_forward(xb, wb, mxu_bf16=True))
    assert jnp.allclose(out_bf16, ref_b, atol=5e-2, rtol=5e-2), "pallas bf16 mismatch"

    print("KERNEL_OK")
</pallas_src>

<mosaic_0001>
module attributes {stable_mosaic.version = 11 : i64} {
  func.func @_linear_nobias_kernel(%arg0: i32, %arg1: i32, %arg2: memref<8x32xf32, #tpu.memory_space<vmem>>, %arg3: memref<32x128xf32, #tpu.memory_space<vmem>>, %arg4: memref<8x128xf32, #tpu.memory_space<vmem>>) attributes {dimension_semantics = [#tpu.dimension_semantics<parallel>, #tpu.dimension_semantics<parallel>], iteration_bounds = array<i64: 1, 1>, scalar_prefetch = 0 : i64, scratch_operands = 0 : i64, tpu.core_type = #tpu.core_type<tc>, window_params = [{transform_indices = @transform_0, window_bounds = array<i64: 8, 32>}, {pipeline_mode = #tpu.pipeline_mode<synchronous>, transform_indices = @transform_1, window_bounds = array<i64: 32, 128>}, {transform_indices = @transform_2, window_bounds = array<i64: 8, 128>}]} {
    %c0 = arith.constant 0 : index
    %c0_0 = arith.constant 0 : index
    %0 = vector.load %arg2[%c0, %c0_0] : memref<8x32xf32, #tpu.memory_space<vmem>>, vector<8x32xf32>
    %c0_1 = arith.constant 0 : index
    %c0_2 = arith.constant 0 : index
    %1 = vector.load %arg3[%c0_1, %c0_2] : memref<32x128xf32, #tpu.memory_space<vmem>>, vector<32x128xf32>
    %cst = arith.constant dense<0.000000e+00> : vector<8x128xf32>
    %2 = tpu.matmul %0, %1, %cst {dimension_numbers = #tpu.dot_dimension_numbers<[1], [0], [0], [1], [0, 0, 1, 1], [], []>} : vector<8x32xf32>, vector<32x128xf32>, vector<8x128xf32> -> vector<8x128xf32>
    %c0_3 = arith.constant 0 : index
    %c0_4 = arith.constant 0 : index
    %3 = vector.load %arg4[%c0_3, %c0_4] : memref<8x128xf32, #tpu.memory_space<vmem>>, vector<8x128xf32>
    tpu.vector_store %arg4[%c0_3, %c0_4], %2 {strides = array<i32>} : memref<8x128xf32, #tpu.memory_space<vmem>>, vector<8x128xf32>,
    return
  }
  func.func @transform_0(%arg0: i32, %arg1: i32) -> (i32, i32) {
    %c0_i32 = arith.constant 0 : i32
    %c0_i32_0 = arith.constant 0 : i32
    return %arg0, %c0_i32 : i32, i32
  }
  func.func @transform_1(%arg0: i32, %arg1: i32) -> (i32, i32) {
    %c0_i32 = arith.constant 0 : i32
    %c0_i32_0 = arith.constant 0 : i32
    return %c0_i32, %arg1 : i32, i32
  }
  func.func @transform_2(%arg0: i32, %arg1: i32) -> (i32, i32) {
    %c0_i32 = arith.constant 0 : i32
    return %arg0, %arg1 : i32, i32
  }
}

module attributes {stable_mosaic.version = 11 : i64} {
  func.func @_linear_nobias_kernel(%arg0: i32, %arg1: i32, %arg2: memref<8x32xf32, #tpu.memory_space<vmem>>, %arg3: memref<32x128xf32, #tpu.memory_space<vmem>>, %arg4: memref<8x128xf32, #tpu.memory_space<vmem>>) attributes {dimension_semantics = [#tpu.dimension_semantics<parallel>, #tpu.dimension_semantics<parallel>], iteration_bounds = array<i64: 1, 1>, scalar_prefetch = 0 : i64, scratch_operands = 0 : i64, tpu.core_type = #tpu.core_type<tc>, window_params = [{transform_indices = @transform_0, window_bounds = array<i64: 8, 32>}, {transform_indices = @transform_1, window_bounds = array<i64: 32, 128>}, {transform_indices = @transform_2, window_bounds = array<i64: 8, 128>}]} {
    %c0 = arith.constant 0 : index
    %c0_0 = arith.constant 0 : index
    %0 = vector.load %arg2[%c0, %c0_0] : memref<8x32xf32, #tpu.memory_space<vmem>>, vector<8x32xf32>
    %c0_1 = arith.constant 0 : index
    %c0_2 = arith.constant 0 : index
    %1 = vector.load %arg3[%c0_1, %c0_2] : memref<32x128xf32, #tpu.memory_space<vmem>>, vector<32x128xf32>
    %cst = arith.constant dense<0.000000e+00> : vector<8x128xf32>
    %2 = tpu.matmul %0, %1, %cst {dimension_numbers = #tpu.dot_dimension_numbers<[1], [0], [0], [1], [0, 0, 1, 1], [], []>} : vector<8x32xf32>, vector<32x128xf32>, vector<8x128xf32> -> vector<8x128xf32>
    %c0_3 = arith.constant 0 : index
    %c0_4 = arith.constant 0 : index
    %3 = vector.load %arg4[%c0_3, %c0_4] : memref<8x128xf32, #tpu.memory_space<vmem>>, vector<8x128xf32>
    tpu.vector_store %arg4[%c0_3, %c0_4], %2 {strides = array<i32>} : memref<8x128xf32, #tpu.memory_space<vmem>>, vector<8x128xf32>,
    return
  }
  func.func @transform_0(%arg0: i32, %arg1: i32) -> (i32, i32) {
    %c0_i32 = arith.constant 0 : i32
    %c0_i32_0 = arith.constant 0 : i32
    return %arg0, %c0_i32 : i32, i32
  }
  func.func @transform_1(%arg0: i32, %arg1: i32) -> (i32, i32) {
    %c0_i32 = arith.constant 0 : i32
    %c0_i32_0 = arith.constant 0 : i32
    return %c0_i32, %arg1 : i32, i32
  }
  func.func @transform_2(%arg0: i32, %arg1: i32) -> (i32, i32) {
    %c0_i32 = arith.constant 0 : i32
    return %arg0, %arg1 : i32, i32
  }
}

</mosaic_0001>

<bundles_post_ra>
// kernel: tpu_custom_call.1
= control target key start
LH: loop header
LB: loop body
LE: loop exit
PB: predicated region body
PF: predicated region fallthrough
CT: control target
= control target key end

     0   :  { %7 = vsyncpa [#allocation3], 0  ;;  %s203_s0 = inlined_call_operand.hbm [shape: f32[8,32], index: 0, kind: input, shape index: {}]   ;;  %s204_s1 = inlined_call_operand.hbm [shape: f32[32,128], index: 1, kind: input, shape index: {}]   ;;  %s205_s2 = inlined_call_operand.hbm [shape: f32[8,128], index: 2, kind: output, shape index: {}]  }
   0x1   :  { %8 = vsyncpa [#allocation6], 0 }
   0x2   :  { %9 = vsyncpa [#allocation4], 0  ;;  %s15_s11 = sshll.u32 %s203_s0, 4  ;;  %s174_s12 = smov [#allocation2]   ;;  %s16_s11 = int_to_ptr.hbm [resolvable:$true] %s15_s11 }
   0x3   :  { %s17_s13 = sshll.u32 %s174_s12, 4  ;;  %s25_s16 = sshll.u32 %s204_s1, 4  ;;  %s18_s13 = int_to_ptr.vmem [resolvable:$true] %s17_s13  ;;  %s26_s16 = int_to_ptr.hbm [resolvable:$true] %s25_s16 }
   0x4   :  { %20 = dma.hbm_to_vmem [thread:$0]  %s16_s11, 128, %s18_s13, [#allocation3]  }
   0x5   :  { %s175_s17 = smov [#allocation5]   ;;  %s176_s19 = smov 128  }
   0x6   :  { %s27_s18 = sshll.u32 %s175_s17, 4  ;;  %s177_s20 = smov 8   ;;  %s28_s18 = int_to_ptr.vmem [resolvable:$true] %s27_s18 }
   0x7   :  { %33 = dma.hbm_to_vmem [thread:$0]  %s26_s16, 512, %s28_s18, [#allocation6], %s176_s19, %s176_s19, %s177_s20  }
   0x8   :  { %168 = dma.done.wait [#allocation3], 128  }
   0x9   :  { %169 = vsyncadd [#allocation3], 4294967168 }
   0xa   :  { %170 = dma.done.wait [#allocation6], 512  }
   0xb   :  { %171 = vsyncadd [#allocation6], 4294966784  ;;  %v46_v0 = vld [vmem:[#allocation5 + $0x18] sm:$0xff]  ;;  %v45_v1 = vld [vmem:[#allocation5 + $0x10] sm:$0xff]  ;;  %vm47_vm0 = vcmask 261120   ;;  %s178_s0 = smov [#allocation7]  }
   0xc   :  { %63 = vmatpush.msra.mxu0 %v46_v0  ;;  %v44_v2 = vld [vmem:[#allocation5 + $0x8] sm:$0xff]  ;;  %v43_v3 = vld [vmem:[#allocation5] sm:$0xff]  ;;  %v42_v4 = vld [vmem:[#allocation2] sm:$0xff]  ;;  %s77_s1 = sshll.u32 %s178_s0, 4  ;;  %s79_s23 = sshll.u32 %s205_s2, 4  ;;  %s78_s1 = int_to_ptr.vmem [resolvable:$true] %s77_s1  ;;  %s80_s23 = int_to_ptr.hbm [resolvable:$true] %s79_s23 }
   0xe   :  { %64 = vmatpush.msra.mxu0 %v45_v1 }
  0x10   :  { %65 = vmatpush.msra.mxu0 %v44_v2 }
  0x12   :  { %66 = vmatpush.msra.mxu0 %v43_v3 }
  0x13   :  { %90 = vmatmul.msk.f32.vlgmr.msra.gmra.mxu0 %vm47_vm0, %v42_v4 }
  0x90   :  { %v68_v5 = vpop.f32.mrf.mxu0 }
  0x91   :  { %71 = vst [vmem:[#allocation7] sm:$0xff] %v68_v5 }
  0x92   :  { %82 = dma.vmem_to_hbm [thread:$0]  %s78_s1, 128, %s80_s23, [#allocation4]  }
  0x93   :  { %172 = dma.done.wait [#allocation4], 128  }
  0x94   :  { %173 = vsyncadd [#allocation4], 4294967168 }
  0x95   :  { %87 = vsyncpa [#allocation3], 1 }
  0x96   :  { %88 = vsyncpa [#allocation6], 1 }
  0x97   :  { %89 = vsyncpa [#allocation4], 1 }

// kernel: tpu_custom_call.1
= control target key start
LH: loop header
LB: loop body
LE: loop exit
PB: predicated region body
PF: predicated region fallthrough
CT: control target
= control target key end

     0   :  { %7 = vsyncpa [#allocation3], 0  ;;  %s203_s0 = inlined_call_operand.hbm [shape: f32[8,32], index: 0, kind: input, shape index: {}]   ;;  %s204_s1 = inlined_call_operand.hbm [shape: f32[32,128], index: 1, kind: input, shape index: {}]   ;;  %s205_s2 = inlined_call_operand.hbm [shape: f32[8,128], index: 2, kind: output, shape index: {}]  }
   0x1   :  { %8 = vsyncpa [#allocation6], 0 }
   0x2   :  { %9 = vsyncpa [#allocation4], 0  ;;  %s15_s11 = sshll.u32 %s203_s0, 4  ;;  %s174_s12 = smov [#allocation2]   ;;  %s16_s11 = int_to_ptr.hbm [resolvable:$true] %s15_s11 }
   0x3   :  { %s17_s13 = sshll.u32 %s174_s12, 4  ;;  %s25_s16 = sshll.u32 %s204_s1, 4  ;;  %s18_s13 = int_to_ptr.vmem [resolvable:$true] %s17_s13  ;;  %s26_s16 = int_to_ptr.hbm [resolvable:$true] %s25_s16 }
   0x4   :  { %20 = dma.hbm_to_vmem [thread:$0]  %s16_s11, 128, %s18_s13, [#allocation3]  }
   0x5   :  { %s175_s17 = smov [#allocation5]   ;;  %s176_s19 = smov 128  }
   0x6   :  { %s27_s18 = sshll.u32 %s175_s17, 4  ;;  %s177_s20 = smov 8   ;;  %s28_s18 = int_to_ptr.vmem [resolvable:$true] %s27_s18 }
   0x7   :  { %33 = dma.hbm_to_vmem [thread:$0]  %s26_s16, 512, %s28_s18, [#allocation6], %s176_s19, %s176_s19, %s177_s20  }
   0x8   :  { %168 = dma.done.wait [#allocation3], 128  }
   0x9   :  { %169 = vsyncadd [#allocation3], 4294967168 }
   0xa   :  { %170 = dma.done.wait [#allocation6], 512  }
   0xb   :  { %171 = vsyncadd [#allocation6], 4294966784  ;;  %v46_v0 = vld [vmem:[#allocation5 + $0x18] sm:$0xff]  ;;  %v45_v1 = vld [vmem:[#allocation5 + $0x10] sm:$0xff]  ;;  %vm47_vm0 = vcmask 261120   ;;  %s178_s0 = smov [#allocation7]  }
   0xc   :  { %63 = vmatpush.msra.mxu0 %v46_v0  ;;  %v44_v2 = vld [vmem:[#allocation5 + $0x8] sm:$0xff]  ;;  %v43_v3 = vld [vmem:[#allocation5] sm:$0xff]  ;;  %v42_v4 = vld [vmem:[#allocation2] sm:$0xff]  ;;  %s77_s1 = sshll.u32 %s178_s0, 4  ;;  %s79_s23 = sshll.u32 %s205_s2, 4  ;;  %s78_s1 = int_to_ptr.vmem [resolvable:$true] %s77_s1  ;;  %s80_s23 = int_to_ptr.hbm [resolvable:$true] %s79_s23 }
   0xe   :  { %64 = vmatpush.msra.mxu0 %v45_v1 }
  0x10   :  { %65 = vmatpush.msra.mxu0 %v44_v2 }
  0x12   :  { %66 = vmatpush.msra.mxu0 %v43_v3 }
  0x13   :  { %90 = vmatmul.msk.f32.vlgmr.msra.gmra.mxu0 %vm47_vm0, %v42_v4 }
  0x90   :  { %v68_v5 = vpop.f32.mrf.mxu0 }
  0x91   :  { %71 = vst [vmem:[#allocation7] sm:$0xff] %v68_v5 }
  0x92   :  { %82 = dma.vmem_to_hbm [thread:$0]  %s78_s1, 128, %s80_s23, [#allocation4]  }
  0x93   :  { %172 = dma.done.wait [#allocation4], 128  }
  0x94   :  { %173 = vsyncadd [#allocation4], 4294967168 }
  0x95   :  { %87 = vsyncpa [#allocation3], 1 }
  0x96   :  { %88 = vsyncpa [#allocation6], 1 }
  0x97   :  { %89 = vsyncpa [#allocation4], 1 }

</bundles_post_ra>
